<compile_context>
chip_gen: v7x
topology: tpu7x:2x2x1
jax: 0.10.0
libtpu: 0.0.40
codegen_flags: <defaults>
</compile_context>

<pallas_src>
import jax
import jax.numpy as jnp
from jax.experimental import pallas as pl
from jax.experimental.pallas import tpu as pltpu

NEG_SLOPE = 0.01   # nn.LeakyReLU default
LANE = 128         # hidden feature dims padded to the lane width


def _leaky_relu(v):
    return jnp.where(v > 0, v, NEG_SLOPE * v)


def top_model_kernel(a_ref, b_ref, w1a_ref, w1b_ref, b1_ref,
                     w2_ref, b2_ref, w3_ref, b3_ref, o_ref):
    # Fused MLP over one (TB, feat) batch tile.  The torch.cat is fused by
    # splitting the first matmul across the two party activations.
    # Inputs arrive as bf16; upcast to f32 before the compare/select.
    ha = _leaky_relu(a_ref[...].astype(jnp.float32))
    hb = _leaky_relu(b_ref[...].astype(jnp.float32))
    h = (jnp.dot(ha, w1a_ref[...], preferred_element_type=jnp.float32)
         + jnp.dot(hb, w1b_ref[...], preferred_element_type=jnp.float32)
         + b1_ref[...])
    h = _leaky_relu(h)
    h = jnp.dot(h, w2_ref[...], preferred_element_type=jnp.float32) + b2_ref[...]
    h = _leaky_relu(h)
    h = jnp.dot(h, w3_ref[...], preferred_element_type=jnp.float32) + b3_ref[...]
    o_ref[...] = h.astype(o_ref.dtype)


def _round_up(x, m):
    return ((x + m - 1) // m) * m


def _pick_batch_tile(batch, tb):
    if batch > tb:
        return tb
    if batch >= 1024:
        # Guarantee >= 2 grid steps so the "parallel" batch axis shards across
        # both v7x TensorCores (harmless single-TC split on v5e/v6e).
        return _round_up(pl.cdiv(batch, 2), 8)
    return batch


def top_model_forward(model_a_output, model_b_output, padded_params, *, tb=4096):
    """padded_params = (w1a, w1b, b1, w2, b2, w3, b3); hidden dims padded to 128.

    tb default (4096) is safe for v7x's 64 MiB VMEM; v5e/v6e (128 MiB VMEM)
    can push it to 8192 for slightly better per-step overhead amortization.
    """
    w1a, w1b, b1, w2, b2, w3, b3 = padded_params
    out_dim = w3.shape[1]
    B, da = model_a_output.shape
    db = model_b_output.shape[1]

    TB = _pick_batch_tile(B, tb)
    nb = pl.cdiv(B, TB)

    batch_spec = lambda f: pl.BlockSpec((TB, f), lambda i: (i, 0))
    const_spec = lambda shape: pl.BlockSpec(shape, lambda i: (0, 0))

    in_bytes = model_a_output.dtype.itemsize
    weight_bytes = 4 * sum(int(p.size) for p in padded_params)
    cost = pl.CostEstimate(
        flops=2 * B * (da * LANE + db * LANE + LANE * LANE + LANE * out_dim),
        transcendentals=0,
        bytes_accessed=in_bytes * B * (da + db) + 4 * B * out_dim + weight_bytes,
    )

    return pl.pallas_call(
        top_model_kernel,
        out_shape=jax.ShapeDtypeStruct((B, out_dim), jnp.float32),
        grid=(nb,),
        in_specs=[
            batch_spec(da), batch_spec(db),
            const_spec(w1a.shape), const_spec(w1b.shape), const_spec(b1.shape),
            const_spec(w2.shape), const_spec(b2.shape),
            const_spec(w3.shape), const_spec(b3.shape),
        ],
        out_specs=pl.BlockSpec((TB, out_dim), lambda i: (i, 0)),
        compiler_params=pltpu.CompilerParams(
            dimension_semantics=("parallel",),
            vmem_limit_bytes=48 << 20,
        ),
        cost_estimate=cost,
    )(model_a_output, model_b_output, w1a, w1b, b1, w2, b2, w3, b3)


def kaiming_normal(key, in_dim, out_dim):
    # init.kaiming_normal_ default: gain=sqrt(2), mode='fan_in' -> std=sqrt(2/fan_in)
    std = (2.0 / in_dim) ** 0.5
    # Stored as [in, out] (transpose of PyTorch's [out, in]).
    return std * jax.random.normal(key, (in_dim, out_dim), dtype=jnp.float32)


def init_params(key, input_dim=200, output_dim=1):
    """Unpadded logical parameters (weights [in,out], zero biases)."""
    k1, k2, k3 = jax.random.split(key, 3)
    w1 = kaiming_normal(k1, input_dim, 100)
    b1 = jnp.zeros((1, 100), jnp.float32)   # nn.Linear bias kept at deterministic zeros
    w2 = kaiming_normal(k2, 100, 10)
    b2 = jnp.zeros((1, 10), jnp.float32)
    w3 = kaiming_normal(k3, 10, output_dim)
    b3 = jnp.zeros((1, output_dim), jnp.float32)
    return (w1, b1, w2, b2, w3, b3)


def pad_and_split_params(params, a_dim=100):
    """Zero-pad hidden feature dims to 128 lanes and split W1 along the concat axis.

    Correctness invariant of the lane-padded math (all guaranteed by zero-fill
    below — do NOT change to non-zero padding):
      * padded cols of W1/b1 and padded rows of W2 are ZERO, so hidden lanes
        100..127 stay exactly 0 through LeakyReLU;
      * padded cols of W2/b2 and padded rows of W3 are ZERO, so hidden lanes
        10..127 never leak into the real output column(s).
    """
    w1, b1, w2, b2, w3, b3 = params
    out_dim = w3.shape[1]

    def pad2(w, rows, cols):
        return jnp.zeros((rows, cols), jnp.float32).at[:w.shape[0], :w.shape[1]].set(w)

    w1p = pad2(w1, w1.shape[0], LANE)            # (200, 128)
    w1a = w1p[:a_dim]                            # (100, 128)
    w1b = w1p[a_dim:]                            # (100, 128)
    b1p = pad2(b1, 1, LANE)                      # (1, 128)
    w2p = pad2(w2, LANE, LANE)                   # (128, 128)
    b2p = pad2(b2, 1, LANE)                      # (1, 128)
    w3p = pad2(w3, LANE, out_dim)                # (128, out_dim) — output not padded
    b3p = b3.astype(jnp.float32).reshape(1, out_dim)

    # Cheap sanity checks of the invariant (concrete arrays, setup-time only).
    assert bool(jnp.all(w2p[100:, :] == 0.0)) and bool(jnp.all(w3p[10:, :] == 0.0))
    return (w1a, w1b, b1p, w2p, b2p, w3p, b3p)


def reference_forward(model_a_output, model_b_output, params):
    # Pure-JAX reference (unpadded) for correctness checking.
    x = jnp.concatenate([model_a_output.astype(jnp.float32),
                         model_b_output.astype(jnp.float32)], axis=1)
    w1, b1, w2, b2, w3, b3 = params
    h = _leaky_relu(x)
    h = _leaky_relu(h @ w1 + b1)
    h = _leaky_relu(h @ w2 + b2)
    return h @ w3 + b3


if __name__ == "__main__":
    key = jax.random.PRNGKey(0)
    kp, ka, kb = jax.random.split(key, 3)

    params = init_params(kp, input_dim=200, output_dim=1)
    padded_params = pad_and_split_params(params, a_dim=100)

    # Case 1: small batch, single tile, bf16 party activations.
    B = 8
    a = jax.random.normal(ka, (B, 100), dtype=jnp.float32).astype(jnp.bfloat16)
    b = jax.random.normal(kb, (B, 100), dtype=jnp.float32).astype(jnp.bfloat16)
    out = jax.block_until_ready(top_model_forward(a, b, padded_params))
    ref = reference_forward(a, b, params)
    assert out.shape == (B, 1)
    assert jnp.allclose(out, ref, atol=2e-3, rtol=2e-3), \
        f"max abs err {float(jnp.max(jnp.abs(out - ref)))}"

    # Case 2: ragged batch tiling (B not a multiple of the batch tile).
    B2 = 20
    a2 = jax.random.normal(jax.random.PRNGKey(1), (B2, 100), jnp.float32).astype(jnp.bfloat16)
    b2 = jax.random.normal(jax.random.PRNGKey(2), (B2, 100), jnp.float32).astype(jnp.bfloat16)
    out2 = jax.block_until_ready(top_model_forward(a2, b2, padded_params, tb=8))
    ref2 = reference_forward(a2, b2, params)
    assert out2.shape == (B2, 1)
    assert jnp.allclose(out2, ref2, atol=2e-3, rtol=2e-3), \
        f"max abs err {float(jnp.max(jnp.abs(out2 - ref2)))}"

    print("KERNEL_OK")
</pallas_src>

<mosaic_0001>
module attributes {stable_mosaic.version = 11 : i64} {
  func.func @top_model_kernel(%arg0: i32, %arg1: memref<8x100xbf16, #tpu.memory_space<vmem>>, %arg2: memref<8x100xbf16, #tpu.memory_space<vmem>>, %arg3: memref<100x128xf32, #tpu.memory_space<vmem>>, %arg4: memref<100x128xf32, #tpu.memory_space<vmem>>, %arg5: memref<1x128xf32, #tpu.memory_space<vmem>>, %arg6: memref<128x128xf32, #tpu.memory_space<vmem>>, %arg7: memref<1x128xf32, #tpu.memory_space<vmem>>, %arg8: memref<128x1xf32, #tpu.memory_space<vmem>>, %arg9: memref<1x1xf32, #tpu.memory_space<vmem>>, %arg10: memref<8x1xf32, #tpu.memory_space<vmem>>) attributes {dimension_semantics = [#tpu.dimension_semantics<parallel>], iteration_bounds = array<i64: 1>, scalar_prefetch = 0 : i64, scratch_operands = 0 : i64, tpu.core_type = #tpu.core_type<tc>, window_params = [{transform_indices = @transform_0, window_bounds = array<i64: 8, 100>}, {transform_indices = @transform_1, window_bounds = array<i64: 8, 100>}, {pipeline_mode = #tpu.pipeline_mode<synchronous>, transform_indices = @transform_2, window_bounds = array<i64: 100, 128>}, {pipeline_mode = #tpu.pipeline_mode<synchronous>, transform_indices = @transform_3, window_bounds = array<i64: 100, 128>}, {pipeline_mode = #tpu.pipeline_mode<synchronous>, transform_indices = @transform_4, window_bounds = array<i64: 1, 128>}, {pipeline_mode = #tpu.pipeline_mode<synchronous>, transform_indices = @transform_5, window_bounds = array<i64: 128, 128>}, {pipeline_mode = #tpu.pipeline_mode<synchronous>, transform_indices = @transform_6, window_bounds = array<i64: 1, 128>}, {pipeline_mode = #tpu.pipeline_mode<synchronous>, transform_indices = @transform_7, window_bounds = array<i64: 128, 1>}, {pipeline_mode = #tpu.pipeline_mode<synchronous>, transform_indices = @transform_8, window_bounds = array<i64: 1, 1>}, {transform_indices = @transform_9, window_bounds = array<i64: 8, 1>}]} {
    %c0 = arith.constant 0 : index
    %c0_0 = arith.constant 0 : index
    %0 = vector.load %arg1[%c0, %c0_0] : memref<8x100xbf16, #tpu.memory_space<vmem>>, vector<8x100xbf16>
    %1 = arith.extf %0 : vector<8x100xbf16> to vector<8x100xf32>
    %cst = arith.constant 0.000000e+00 : f32
    %2 = vector.broadcast %cst : f32 to vector<8x100xf32>
    %3 = arith.cmpf ogt, %1, %2 : vector<8x100xf32>
    %cst_1 = arith.constant 0.00999999977 : f32
    %4 = vector.broadcast %cst_1 : f32 to vector<8x100xf32>
    %5 = arith.mulf %4, %1 : vector<8x100xf32>
    %6 = arith.select %3, %1, %5 : vector<8x100xi1>, vector<8x100xf32>
    %c0_2 = arith.constant 0 : index
    %c0_3 = arith.constant 0 : index
    %7 = vector.load %arg2[%c0_2, %c0_3] : memref<8x100xbf16, #tpu.memory_space<vmem>>, vector<8x100xbf16>
    %8 = arith.extf %7 : vector<8x100xbf16> to vector<8x100xf32>
    %cst_4 = arith.constant 0.000000e+00 : f32
    %9 = vector.broadcast %cst_4 : f32 to vector<8x100xf32>
    %10 = arith.cmpf ogt, %8, %9 : vector<8x100xf32>
    %cst_5 = arith.constant 0.00999999977 : f32
    %11 = vector.broadcast %cst_5 : f32 to vector<8x100xf32>
    %12 = arith.mulf %11, %8 : vector<8x100xf32>
    %13 = arith.select %10, %8, %12 : vector<8x100xi1>, vector<8x100xf32>
    %c0_6 = arith.constant 0 : index
    %c0_7 = arith.constant 0 : index
    %14 = vector.load %arg3[%c0_6, %c0_7] : memref<100x128xf32, #tpu.memory_space<vmem>>, vector<100x128xf32>
    %cst_8 = arith.constant dense<0.000000e+00> : vector<8x128xf32>
    %15 = tpu.matmul %6, %14, %cst_8 {dimension_numbers = #tpu.dot_dimension_numbers<[1], [0], [0], [1], [0, 0, 1, 1], [], []>} : vector<8x100xf32>, vector<100x128xf32>, vector<8x128xf32> -> vector<8x128xf32>
    %c0_9 = arith.constant 0 : index
    %c0_10 = arith.constant 0 : index
    %16 = vector.load %arg4[%c0_9, %c0_10] : memref<100x128xf32, #tpu.memory_space<vmem>>, vector<100x128xf32>
    %cst_11 = arith.constant dense<0.000000e+00> : vector<8x128xf32>
    %17 = tpu.matmul %13, %16, %cst_11 {dimension_numbers = #tpu.dot_dimension_numbers<[1], [0], [0], [1], [0, 0, 1, 1], [], []>} : vector<8x100xf32>, vector<100x128xf32>, vector<8x128xf32> -> vector<8x128xf32>
    %18 = arith.addf %15, %17 : vector<8x128xf32>
    %c0_12 = arith.constant 0 : index
    %c0_13 = arith.constant 0 : index
    %19 = vector.load %arg5[%c0_12, %c0_13] : memref<1x128xf32, #tpu.memory_space<vmem>>, vector<1x128xf32>
    %20 = vector.broadcast %19 : vector<1x128xf32> to vector<8x128xf32>
    %21 = arith.addf %18, %20 : vector<8x128xf32>
    %cst_14 = arith.constant 0.000000e+00 : f32
    %22 = vector.broadcast %cst_14 : f32 to vector<8x128xf32>
    %23 = arith.cmpf ogt, %21, %22 : vector<8x128xf32>
    %cst_15 = arith.constant 0.00999999977 : f32
    %24 = vector.broadcast %cst_15 : f32 to vector<8x128xf32>
    %25 = arith.mulf %24, %21 : vector<8x128xf32>
    %26 = arith.select %23, %21, %25 : vector<8x128xi1>, vector<8x128xf32>
    %c0_16 = arith.constant 0 : index
    %c0_17 = arith.constant 0 : index
    %27 = vector.load %arg6[%c0_16, %c0_17] : memref<128x128xf32, #tpu.memory_space<vmem>>, vector<128x128xf32>
    %cst_18 = arith.constant dense<0.000000e+00> : vector<8x128xf32>
    %28 = tpu.matmul %26, %27, %cst_18 {dimension_numbers = #tpu.dot_dimension_numbers<[1], [0], [0], [1], [0, 0, 1, 1], [], []>} : vector<8x128xf32>, vector<128x128xf32>, vector<8x128xf32> -> vector<8x128xf32>
    %c0_19 = arith.constant 0 : index
    %c0_20 = arith.constant 0 : index
    %29 = vector.load %arg7[%c0_19, %c0_20] : memref<1x128xf32, #tpu.memory_space<vmem>>, vector<1x128xf32>
    %30 = vector.broadcast %29 : vector<1x128xf32> to vector<8x128xf32>
    %31 = arith.addf %28, %30 : vector<8x128xf32>
    %cst_21 = arith.constant 0.000000e+00 : f32
    %32 = vector.broadcast %cst_21 : f32 to vector<8x128xf32>
    %33 = arith.cmpf ogt, %31, %32 : vector<8x128xf32>
    %cst_22 = arith.constant 0.00999999977 : f32
    %34 = vector.broadcast %cst_22 : f32 to vector<8x128xf32>
    %35 = arith.mulf %34, %31 : vector<8x128xf32>
    %36 = arith.select %33, %31, %35 : vector<8x128xi1>, vector<8x128xf32>
    %c0_23 = arith.constant 0 : index
    %c0_24 = arith.constant 0 : index
    %37 = vector.load %arg8[%c0_23, %c0_24] : memref<128x1xf32, #tpu.memory_space<vmem>>, vector<128x1xf32>
    %cst_25 = arith.constant dense<0.000000e+00> : vector<8x1xf32>
    %38 = tpu.matmul %36, %37, %cst_25 {dimension_numbers = #tpu.dot_dimension_numbers<[1], [0], [0], [1], [0, 0, 1, 1], [], []>} : vector<8x128xf32>, vector<128x1xf32>, vector<8x1xf32> -> vector<8x1xf32>
    %c0_26 = arith.constant 0 : index
    %c0_27 = arith.constant 0 : index
    %39 = vector.load %arg9[%c0_26, %c0_27] : memref<1x1xf32, #tpu.memory_space<vmem>>, vector<1x1xf32>
    %40 = vector.broadcast %39 : vector<1x1xf32> to vector<8x1xf32>
    %41 = arith.addf %38, %40 : vector<8x1xf32>
    %c0_28 = arith.constant 0 : index
    %c0_29 = arith.constant 0 : index
    %42 = vector.load %arg10[%c0_28, %c0_29] : memref<8x1xf32, #tpu.memory_space<vmem>>, vector<8x1xf32>
    tpu.vector_store %arg10[%c0_28, %c0_29], %41 {strides = array<i32>} : memref<8x1xf32, #tpu.memory_space<vmem>>, vector<8x1xf32>,
    return
  }
  func.func @transform_0(%arg0: i32) -> (i32, i32) {
    %c0_i32 = arith.constant 0 : i32
    %c0_i32_0 = arith.constant 0 : i32
    return %arg0, %c0_i32 : i32, i32
  }
  func.func @transform_1(%arg0: i32) -> (i32, i32) {
    %c0_i32 = arith.constant 0 : i32
    %c0_i32_0 = arith.constant 0 : i32
    return %arg0, %c0_i32 : i32, i32
  }
  func.func @transform_2(%arg0: i32) -> (i32, i32) {
    %c0_i32 = arith.constant 0 : i32
    %c0_i32_0 = arith.constant 0 : i32
    %c0_i32_1 = arith.constant 0 : i32
    return %c0_i32, %c0_i32_0 : i32, i32
  }
  func.func @transform_3(%arg0: i32) -> (i32, i32) {
    %c0_i32 = arith.constant 0 : i32
    %c0_i32_0 = arith.constant 0 : i32
    %c0_i32_1 = arith.constant 0 : i32
    return %c0_i32, %c0_i32_0 : i32, i32
  }
  func.func @transform_4(%arg0: i32) -> (i32, i32) {
    %c0_i32 = arith.constant 0 : i32
    %c0_i32_0 = arith.constant 0 : i32
    %c0_i32_1 = arith.constant 0 : i32
    return %c0_i32, %c0_i32_0 : i32, i32
  }
  func.func @transform_5(%arg0: i32) -> (i32, i32) {
    %c0_i32 = arith.constant 0 : i32
    %c0_i32_0 = arith.constant 0 : i32
    %c0_i32_1 = arith.constant 0 : i32
    return %c0_i32, %c0_i32_0 : i32, i32
  }
  func.func @transform_6(%arg0: i32) -> (i32, i32) {
    %c0_i32 = arith.constant 0 : i32
    %c0_i32_0 = arith.constant 0 : i32
    %c0_i32_1 = arith.constant 0 : i32
    return %c0_i32, %c0_i32_0 : i32, i32
  }
  func.func @transform_7(%arg0: i32) -> (i32, i32) {
    %c0_i32 = arith.constant 0 : i32
    %c0_i32_0 = arith.constant 0 : i32
    %c0_i32_1 = arith.constant 0 : i32
    return %c0_i32, %c0_i32_0 : i32, i32
  }
  func.func @transform_8(%arg0: i32) -> (i32, i32) {
    %c0_i32 = arith.constant 0 : i32
    %c0_i32_0 = arith.constant 0 : i32
    %c0_i32_1 = arith.constant 0 : i32
    return %c0_i32, %c0_i32_0 : i32, i32
  }
  func.func @transform_9(%arg0: i32) -> (i32, i32) {
    %c0_i32 = arith.constant 0 : i32
    %c0_i32_0 = arith.constant 0 : i32
    return %arg0, %c0_i32 : i32, i32
  }
}

</mosaic_0001>

<bundles_post_ra>
// kernel: tpu_custom_call.1
= control target key start
LH: loop header
LB: loop body
LE: loop exit
PB: predicated region body
PF: predicated region fallthrough
CT: control target
= control target key end

     0   :  { %s1029_s0 = inlined_call_operand.vmem [shape: bf16[8,100], index: 0, kind: input, shape index: {}]   ;;  %s1030_s1 = inlined_call_operand.vmem [shape: bf16[8,100], index: 1, kind: input, shape index: {}]   ;;  %s1031_s2 = inlined_call_operand.hbm [shape: f32[100,128], index: 2, kind: input, shape index: {}]   ;;  %s1032_s3 = inlined_call_operand.hbm [shape: f32[100,128], index: 3, kind: input, shape index: {}]   ;;  %s1033_s4 = inlined_call_operand.vmem [shape: f32[1,128], index: 4, kind: input, shape index: {}]   ;;  %s1034_s5 = inlined_call_operand.vmem [shape: f32[128,128], index: 5, kind: input, shape index: {}]   ;;  %s1035_s6 = inlined_call_operand.vmem [shape: f32[1,128], index: 6, kind: input, shape index: {}]   ;;  %s1036_s7 = inlined_call_operand.vmem [shape: f32[128,1], index: 7, kind: input, shape index: {}]   ;;  %s1037_s8 = inlined_call_operand.<no memory space> [shape: f32[1,1], index: 8, kind: input, shape index: {}]   ;;  %s1038_s9 = inlined_call_operand.vmem [shape: f32[8,1], index: 9, kind: output, shape index: {}]  }
   0x1   :  { %v14_v0 = vstv %s1037_s8 }
   0x2   :  { %15 = vst [vmem:[#allocation2] sm:$0x1] %v14_v0 }
   0x3   :  { %16 = vsyncpa [#allocation4], 0 }
   0x4   :  { %17 = vsyncpa [#allocation6], 0  ;;  %s796_s11 = smov [#allocation3]   ;;  %s748_s15 = scalar_lea.hbm %s1031_s2, 1664 }
   0x5   :  { %s27_s12 = sshll.u32 %s796_s11, 4  ;;  %p749_p0 = scmp.ne.s32.totalorder %s1031_s2, %s748_s15  ;;  %s28_s12 = int_to_ptr.vmem [resolvable:$true] %s27_s12 }
   0x6   :  { %p752_p1 = scmp.lt.u32.totalorder %s748_s15, %s1031_s2 }
   0x8   :  { %p754_p2 = pnand %p752_p1, %p749_p0 }
   0xa   :  { %757 = shalt.err (!%p754_p2)
}
   0xb   :  { %s758_s8 = scalar_lea.vmem %s28_s12, 1664  ;;  %p763_p4 = scmp.lt.s32.totalorder %s28_s12, %s28_s12 }
   0xc   :  { %p759_p3 = scmp.ne.s32.totalorder %s28_s12, %s758_s8  ;;  %p764_p5 = scmp.lt.s32.totalorder %s758_s8, %s758_s8 }
   0xe   :  { %p765_p6 = por %p764_p5, %p763_p4 }
  0x10   :  { %p766_p7 = pnand %p765_p6, %p759_p3 }
  0x12   :  { %769 = shalt.err (!%p766_p7)
}
  0x13   :  { %s797_s20 = smov 128   ;;  %s798_s21 = smov 8  }
  0x14   :  { %33 = dma.hbm_to_vmem [thread:$0]  %s1031_s2, 1664, %s28_s12, [#allocation4], %s797_s20, %s797_s20, %s798_s21  }
  0x15   :  { %s799_s24 = smov [#allocation5]   ;;  %s770_s28 = scalar_lea.hbm %s1032_s3, 1664 }
  0x16   :  { %s39_s25 = sshll.u32 %s799_s24, 4  ;;  %p771_p8 = scmp.ne.s32.totalorder %s1032_s3, %s770_s28  ;;  %s40_s25 = int_to_ptr.vmem [resolvable:$true] %s39_s25 }
  0x17   :  { %p774_p9 = scmp.lt.u32.totalorder %s770_s28, %s1032_s3 }
  0x19   :  { %p776_p10 = pnand %p774_p9, %p771_p8 }
  0x1b   :  { %779 = shalt.err (!%p776_p10)
}
  0x1c   :  { %s780_s13 = scalar_lea.vmem %s40_s25, 1664  ;;  %p785_p12 = scmp.lt.s32.totalorder %s40_s25, %s40_s25 }
  0x1d   :  { %p781_p11 = scmp.ne.s32.totalorder %s40_s25, %s780_s13  ;;  %p786_p13 = scmp.lt.s32.totalorder %s780_s13, %s780_s13 }
  0x1f   :  { %p787_p0 = por %p786_p13, %p785_p12 }
  0x21   :  { %p788_p1 = pnand %p787_p0, %p781_p11 }
  0x23   :  { %791 = shalt.err (!%p788_p1)
}
  0x24   :  { %45 = dma.hbm_to_vmem [thread:$0]  %s1032_s3, 1664, %s40_s25, [#allocation6], %s797_s20, %s797_s20, %s798_s21  }
  0x25   :  { %792 = dma.done.wait [#allocation4], 1664  }
  0x26   :  { %793 = vsyncadd [#allocation4], 4294965632 }
  0x27   :  { %794 = dma.done.wait [#allocation6], 1664  }
  0x28   :  { %795 = vsyncadd [#allocation6], 4294965632  ;;  %v800_v1 = vmov 0.0|0.0   ;;  %vm801_vm0 = vmmov 0   ;;  %v802_v2 = vmov 0.0   ;;  %v85_v3 = vld [vmem:[#allocation5] sm:$0xff] }
  0x29   :  { %657 = vmatprep.subr.bf16.mxu0 %v800_v1  ;;  %675 = vmatprep.subr.bf16.mxu1 %v800_v1  ;;  %v86_v4 = vld [vmem:[#allocation5 + $0x8] sm:$0xff]  ;;  %v72_v5 = vld [vmem:[#allocation3] sm:$0xff]  ;;  %v73_v7 = vld [vmem:[#allocation3 + $0x8] sm:$0xff]  ;;  %vm102_vm3 = vcmask 1043456   ;;  %vm98_vm4 = vcmask 818176   ;;  %vm452_vm7 = vcmask 7168  }
  0x2a   :  { %555 = vmatprep.mubr.msk.f32.mxu0 %vm801_vm0, %v802_v2  ;;  %584 = vmatprep.mubr.msk.f32.mxu1 %vm801_vm0, %v802_v2  ;;  %v658_v6 = vpack.c.bf16 %v86_v4, %v85_v3  ;;  %v87_v8 = vld [vmem:[#allocation5 + $0x10] sm:$0xff]  ;;  %v88_v9 = vld [vmem:[#allocation5 + $0x18] sm:$0xff]  ;;  %v676_v10 = vpack.c.bf16 %v73_v7, %v72_v5  ;;  %v74_v11 = vld [vmem:[#allocation3 + $0x10] sm:$0xff] }
  0x2b   :  { %v75_v12 = vld [vmem:[#allocation3 + $0x18] sm:$0xff]  ;;  %v661_v13 = vpack.c.bf16 %v88_v9, %v87_v8  ;;  %v89_v15 = vld [vmem:[#allocation5 + $0x20] sm:$0xff]  ;;  %v90_v16 = vld [vmem:[#allocation5 + $0x28] sm:$0xff] }
  0x2c   :  { %659 = vmatpush3.bf16.msra.mxu0 %v658_v6  ;;  %677 = vmatpush3.bf16.msra.mxu1 %v676_v10  ;;  %v679_v14 = vpack.c.bf16 %v75_v12, %v74_v11  ;;  %v76_v17 = vld [vmem:[#allocation3 + $0x20] sm:$0xff]  ;;  %v77_v18 = vld [vmem:[#allocation3 + $0x28] sm:$0xff]  ;;  %v664_v19 = vpack.c.bf16 %v90_v16, %v89_v15  ;;  %v91_v21 = vld [vmem:[#allocation5 + $0x30] sm:$0xff] }
  0x2d   :  { %660 = vmatprep.subr.bf16.mxu0 %v800_v1  ;;  %678 = vmatprep.subr.bf16.mxu1 %v800_v1  ;;  %v682_v20 = vpack.c.bf16 %v77_v18, %v76_v17  ;;  %v92_v22 = vld [vmem:[#allocation5 + $0x38] sm:$0xff]  ;;  %v78_v23 = vld [vmem:[#allocation3 + $0x30] sm:$0xff]  ;;  %v79_v24 = vld [vmem:[#allocation3 + $0x38] sm:$0xff] }
  0x2e   :  { %v667_v25 = vpack.c.bf16 %v92_v22, %v91_v21  ;;  %v685_v26 = vpack.c.bf16 %v79_v24, %v78_v23  ;;  %v93_v27 = vld [vmem:[#allocation5 + $0x40] sm:$0xff]  ;;  %v94_v28 = vld [vmem:[#allocation5 + $0x48] sm:$0xff]  ;;  %v80_v29 = vld [vmem:[#allocation3 + $0x40] sm:$0xff] }
  0x2f   :  { %v81_v30 = vld [vmem:[#allocation3 + $0x48] sm:$0xff]  ;;  %v67_v31 = vld [vmem:[%s1030_s1] sm:$0xf]  ;;  %v670_v32 = vpack.c.bf16 %v94_v28, %v93_v27  ;;  %v82_v37 = vld [vmem:[#allocation3 + $0x50] sm:$0xff] }
  0x30   :  { %662 = vmatpush3.bf16.msra.mxu0 %v661_v13  ;;  %680 = vmatpush3.bf16.msra.mxu1 %v679_v14  ;;  %v62_v33 = vld [vmem:[%s1029_s0] sm:$0xf]  ;;  %v688_v34 = vpack.c.bf16 %v81_v30, %v80_v29  ;;  %v68_v39 = vunpack.c.l.bf16 %v67_v31  ;;  %v264_v46 = vld [vmem:[%s1034_s5 + $0x8] sm:$0xff]  ;;  %v265_v52 = vld [vmem:[%s1034_s5 + $0x10] sm:$0xff] }
  0x31   :  { %663 = vmatprep.subr.bf16.mxu0 %v800_v1  ;;  %681 = vmatprep.subr.bf16.mxu1 %v800_v1  ;;  %v95_v35 = vld [vmem:[#allocation5 + $0x50] sm:$0xff]  ;;  %v96_v36 = vld [vmem:[#allocation5 + $0x58] sm:$0xff]  ;;  %v63_v40 = vunpack.c.l.bf16 %v62_v33  ;;  %v97_v47 = vld [vmem:[#allocation5 + $0x60] sm:$0xf] }
  0x32   :  { %v83_v38 = vld [vmem:[#allocation3 + $0x58] sm:$0xff]  ;;  %v673_v41 = vpack.c.bf16 %v96_v36, %v95_v35  ;;  %v70_v43 = vmul.f32 0.01, %v68_v39  ;;  %vm69_vm1 = vcmp.gt.f32.partialorder %v68_v39, 0.0  ;;  %v84_v48 = vld [vmem:[#allocation3 + $0x60] sm:$0xf] }
  0x33   :  { %v691_v42 = vpack.c.bf16 %v83_v38, %v82_v37  ;;  %v65_v44 = vmul.f32 0.01, %v63_v40  ;;  %vm64_vm2 = vcmp.gt.f32.partialorder %v63_v40, 0.0  ;;  %v263_v45 = vld [vmem:[%s1034_s5] sm:$0xff]  ;;  %v266_v53 = vld [vmem:[%s1034_s5 + $0x18] sm:$0xff]  ;;  %v268_v56 = vld [vmem:[%s1034_s5 + $0x28] sm:$0xff] }
  0x34   :  { %665 = vmatpush3.bf16.msra.mxu0 %v664_v19  ;;  %683 = vmatpush3.bf16.msra.mxu1 %v682_v20  ;;  %v71_v49 = vsel %vm69_vm1, %v68_v39, %v70_v43  ;;  %v694_v51 = vpack.c.bf16 %v264_v46, %v263_v45  ;;  %v697_v54 = vpack.c.bf16 %v266_v53, %v265_v52  ;;  %v267_v55 = vld [vmem:[%s1034_s5 + $0x20] sm:$0xff]  ;;  %v269_v58 = vld [vmem:[%s1034_s5 + $0x30] sm:$0xff]  ;;  %v270_v59 = vld [vmem:[%s1034_s5 + $0x38] sm:$0xff] }
  0x35   :  { %666 = vmatprep.subr.bf16.mxu0 %v800_v1  ;;  %684 = vmatprep.subr.bf16.mxu1 %v800_v1  ;;  %v66_v50 = vsel %vm64_vm2, %v63_v40, %v65_v44  ;;  %v700_v57 = vpack.c.bf16 %v268_v56, %v267_v55  ;;  %v703_v60 = vpack.c.bf16 %v270_v59, %v269_v58  ;;  %v271_v61 = vld [vmem:[%s1034_s5 + $0x40] sm:$0xff]  ;;  %v272_v62 = vld [vmem:[%s1034_s5 + $0x48] sm:$0xff]  ;;  %v273_v0 = vld [vmem:[%s1034_s5 + $0x50] sm:$0xff] }
  0x36   :  { %v706_v63 = vpack.c.bf16 %v272_v62, %v271_v61  ;;  %v275_v4 = vld [vmem:[%s1034_s5 + $0x60] sm:$0xff]  ;;  %v276_v5 = vld [vmem:[%s1034_s5 + $0x68] sm:$0xff]  ;;  %v277_v7 = vld [vmem:[%s1034_s5 + $0x70] sm:$0xff] }
  0x37   :  { %v712_v6 = vpack.c.bf16 %v276_v5, %v275_v4  ;;  %v278_v8 = vld [vmem:[%s1034_s5 + $0x78] sm:$0xff]  ;;  %v359_v10 = vld [vmem:[%s1036_s7] sm:$0xff]  ;;  %v360_v11 = vld [vmem:[%s1036_s7 + $0x8] sm:$0xff] }
  0x38   :  { %668 = vmatpush3.bf16.msra.mxu0 %v667_v25  ;;  %686 = vmatpush3.bf16.msra.mxu1 %v685_v26  ;;  %v715_v9 = vpack.c.bf16 %v278_v8, %v277_v7  ;;  %v361_v12 = vld [vmem:[%s1036_s7 + $0x10] sm:$0xff]  ;;  %v718_v13 = vpack.c.bf16 %v360_v11, %v359_v10  ;;  %v362_v14 = vld [vmem:[%s1036_s7 + $0x18] sm:$0xff]  ;;  %v363_v16 = vld [vmem:[%s1036_s7 + $0x20] sm:$0xff] }
  0x39   :  { %669 = vmatprep.subr.bf16.mxu0 %v800_v1  ;;  %687 = vmatprep.subr.bf16.mxu1 %v800_v1  ;;  %v721_v15 = vpack.c.bf16 %v362_v14, %v361_v12  ;;  %v364_v17 = vld [vmem:[%s1036_s7 + $0x28] sm:$0xff]  ;;  %v365_v19 = vld [vmem:[%s1036_s7 + $0x30] sm:$0xff]  ;;  %v366_v20 = vld [vmem:[%s1036_s7 + $0x38] sm:$0xff] }
  0x3a   :  { %v724_v18 = vpack.c.bf16 %v364_v17, %v363_v16  ;;  %v727_v21 = vpack.c.bf16 %v366_v20, %v365_v19  ;;  %v367_v22 = vld [vmem:[%s1036_s7 + $0x40] sm:$0xff]  ;;  %v368_v23 = vld [vmem:[%s1036_s7 + $0x48] sm:$0xff]  ;;  %v369_v25 = vld [vmem:[%s1036_s7 + $0x50] sm:$0xff] }
  0x3b   :  { %v730_v24 = vpack.c.bf16 %v368_v23, %v367_v22  ;;  %v370_v26 = vld [vmem:[%s1036_s7 + $0x58] sm:$0xff]  ;;  %v371_v28 = vld [vmem:[%s1036_s7 + $0x60] sm:$0xff]  ;;  %v372_v29 = vld [vmem:[%s1036_s7 + $0x68] sm:$0xff] }
  0x3c   :  { %671 = vmatpush3.bf16.msra.mxu0 %v670_v32  ;;  %689 = vmatpush3.bf16.msra.mxu1 %v688_v34  ;;  %v733_v27 = vpack.c.bf16 %v370_v26, %v369_v25  ;;  %v736_v30 = vpack.c.bf16 %v372_v29, %v371_v28  ;;  %v464_v33 = vld [vmem:[%s1033_s4] ss:$0 sm:$0xff]  ;;  %v373_v40 = vld [vmem:[%s1036_s7 + $0x70] sm:$0xff] }
  0x3d   :  { %672 = vmatprep.subr.bf16.mxu0 %v800_v1  ;;  %690 = vmatprep.subr.bf16.mxu1 %v800_v1 }
  0x40   :  { %674 = vmatpush3.bf16.msra.mxu0 %v673_v41  ;;  %692 = vmatpush3.bf16.msra.mxu1 %v691_v42  ;;  %v465_v42 = vld [vmem:[%s1035_s6] ss:$0 sm:$0xff] }
  0x41   :  { %553 = vmatprep.subr.mxu0 %v802_v2  ;;  %582 = vmatprep.subr.mxu1 %v802_v2 }
  0x44   :  { %554 = vmatpush3.msk.msra.mxu0 %vm102_vm3, %v97_v47  ;;  %583 = vmatpush3.msk.msra.mxu1 %vm102_vm3, %v84_v48  ;;  %v466_v48 = vld [vmem:[#allocation2] ss:$0 sm:$0xff] }
  0x45   :  { %556 = vmatmul.mubr.msk.f32.vlgmr.msra.gmra.mrb[0].mxu0 %vm98_vm4, %v71_v49  ;;  %585 = vmatmul.mubr.msk.f32.vlgmr.msra.gmra.mrb[0].mxu1 %vm98_vm4, %v66_v50 }
  0x46   :  { %693 = vmatprep.subr.bf16.mxu0 %v800_v1  ;;  %619 = vmatprep.mubr.msk.f32.mxu0 %vm801_vm0, %v802_v2 }
  0x47   :  { %695 = vmatpush3.bf16.msra.mxu0 %v694_v51  ;;  %717 = vmatprep.subr.bf16.mxu1 %v800_v1 }
  0x48   :  { %696 = vmatprep.subr.bf16.mxu0 %v800_v1  ;;  %654 = vmatprep.mubr.msk.f32.mxu1 %vm801_vm0, %v802_v2  ;;  %v274_v2 = vld [vmem:[%s1034_s5 + $0x58] sm:$0xff] }
  0x49   :  { %v709_v3 = vpack.c.bf16 %v274_v2, %v273_v0  ;;  %719 = vmatpush3.bf16.msra.mxu1 %v718_v13 }
  0x4a   :  { %720 = vmatprep.subr.bf16.mxu1 %v800_v1 }
  0x4b   :  { %698 = vmatpush3.bf16.msra.mxu0 %v697_v54 }
  0x4c   :  { %699 = vmatprep.subr.bf16.mxu0 %v800_v1 }
  0x4d   :  { %722 = vmatpush3.bf16.msra.mxu1 %v721_v15 }
  0x4e   :  { %723 = vmatprep.subr.bf16.mxu1 %v800_v1 }
  0x4f   :  { %701 = vmatpush3.bf16.msra.mxu0 %v700_v57 }
  0x50   :  { %702 = vmatprep.subr.bf16.mxu0 %v800_v1 }
  0x51   :  { %725 = vmatpush3.bf16.msra.mxu1 %v724_v18 }
  0x52   :  { %726 = vmatprep.subr.bf16.mxu1 %v800_v1 }
  0x53   :  { %704 = vmatpush3.bf16.msra.mxu0 %v703_v60 }
  0x54   :  { %705 = vmatprep.subr.bf16.mxu0 %v800_v1 }
  0x55   :  { %728 = vmatpush3.bf16.msra.mxu1 %v727_v21 }
  0x56   :  { %729 = vmatprep.subr.bf16.mxu1 %v800_v1 }
  0x57   :  { %707 = vmatpush3.bf16.msra.mxu0 %v706_v63 }
  0x58   :  { %708 = vmatprep.subr.bf16.mxu0 %v800_v1 }
  0x59   :  { %731 = vmatpush3.bf16.msra.mxu1 %v730_v24 }
  0x5a   :  { %732 = vmatprep.subr.bf16.mxu1 %v800_v1 }
  0x5b   :  { %710 = vmatpush3.bf16.msra.mxu0 %v709_v3 }
  0x5c   :  { %711 = vmatprep.subr.bf16.mxu0 %v800_v1 }
  0x5d   :  { %734 = vmatpush3.bf16.msra.mxu1 %v733_v27 }
  0x5e   :  { %735 = vmatprep.subr.bf16.mxu1 %v800_v1 }
  0x5f   :  { %713 = vmatpush3.bf16.msra.mxu0 %v712_v6 }
  0x60   :  { %714 = vmatprep.subr.bf16.mxu0 %v800_v1 }
  0x61   :  { %737 = vmatpush3.bf16.msra.mxu1 %v736_v30 }
  0x62   :  { %738 = vmatprep.subr.bf16.mxu1 %v800_v1  ;;  %v374_v1 = vld [vmem:[%s1036_s7 + $0x78] sm:$0xff] }
  0x63   :  { %716 = vmatpush3.bf16.msra.mxu0 %v715_v9  ;;  %v739_v41 = vpack.c.bf16 %v374_v1, %v373_v40 }
  0x65   :  { %740 = vmatpush3.bf16.msra.mxu1 %v739_v41 }
 0x118   :  { %v172_v31 = vpop.f32.mrb[0].mxu0  ;;  %v248_v32 = vpop.f32.mrb[0].mxu1 }
 0x119   :  { %v557_v34 = vpop.f32.mrb[1].mxu0  ;;  %v249_v35 = vadd.f32 %v248_v32, %v172_v31  ;;  %v586_v36 = vpop.f32.mrb[1].mxu1 }
 0x11b   :  { %v259_v37 = vadd.f32 %v464_v33, %v249_v35 }
 0x11d   :  { %v261_v38 = vmul.f32 0.01, %v259_v37  ;;  %vm260_vm5 = vcmp.gt.f32.partialorder %v259_v37, 0.0 }
 0x11f   :  { %v262_v39 = vsel %vm260_vm5, %v259_v37, %v261_v38 }
 0x120   :  { %620 = vmatmul.mubr.f32.vlgmr.msra.gmra.mrb[2].mxu0 %v262_v39 }
 0x1f3   :  { %v352_v43 = vpop.f32.mrb[2].mxu0 }
 0x1f4   :  { %v353_v44 = vadd.f32 %v465_v42, %v352_v43  ;;  %v621_v45 = vpop.f32.mrb[3].mxu0 }
 0x1f6   :  { %vm356_vm6 = vcmp.gt.f32.partialorder %v353_v44, 0.0  ;;  %v357_v46 = vmul.f32 0.01, %v353_v44 }
 0x1f8   :  { %v358_v47 = vsel %vm356_vm6, %v353_v44, %v357_v46 }
 0x1f9   :  { %655 = vmatmul.mubr.f32.vlgmr.msra.gmra.mrb[2].mxu1 %v358_v47 }
 0x2cc   :  { %v448_v49 = vpop.f32.mrb[2].mxu1 }
 0x2cd   :  { %v449_v50 = vadd.f32 %v466_v48, %v448_v49  ;;  %v656_v51 = vpop.f32.mrb[3].mxu1 }
 0x2cf   :  { %453 = vst.msk [vmem:[%s1038_s9] sm:$0xff] %vm452_vm7, %v449_v50 }
 0x2d0   :  { %458 = vsyncpa [#allocation4], 1 }
 0x2d1   :  { %459 = vsyncpa [#allocation6], 1 }

</bundles_post_ra>
